<compile_context>
chip_gen: v7x
topology: tpu7x:2x2x1
jax: 0.10.0
libtpu: 0.0.40
codegen_flags: <defaults>
</compile_context>

<pallas_src>
import numpy as np
import jax
import jax.numpy as jnp
from jax.experimental import pallas as pl
from jax.experimental.pallas import tpu as pltpu  # noqa: F401 (TPU backend)

# ---------------- small deterministic config ----------------
B = 2            # batch_size
M = 4            # enc_in (number of variables)
L = 16           # seq_len
PRED = 8         # pred_len
PATCH = 4        # patch_size
STRIDE = 4       # stride
D_MODEL = 32     # d_model
D_FF = 32        # d_ff
LLM_D = 768      # GPT-2 hidden width (only used by the reference check)
SPLIT_LEN = 2
LEN_P = 4        # fix-prompt token length
LEN_T = 4        # task-prompt token length

BM = B * M
PATCH_NUM = (L - PATCH) // STRIDE + 1 + 1          # +1 from ReplicationPad1d((0, stride))
HEAD_NF = D_FF * PATCH_NUM
P_INTERVAL = PATCH_NUM // SPLIT_LEN
TOTAL_LEN = PATCH_NUM + LEN_P * (SPLIT_LEN - 1) + LEN_T

# With the identity backbone surrogate, the head reads the last PATCH_NUM of
# the TOTAL_LEN interleaved tokens: the last N_ENC_TAIL patch embeddings
# followed by the LEN_T task-prompt tokens.  (fix_prompt feeds only tokens the
# head never sees, so it is kept in params but not passed to the kernel.)
N_ENC_TAIL = PATCH_NUM - LEN_T
assert 0 <= N_ENC_TAIL <= PATCH_NUM
assert PATCH_NUM - P_INTERVAL * (SPLIT_LEN - 1) >= N_ENC_TAIL
assert D_FF == D_MODEL   # slice [:, :, :d_ff] of the 768-padded token == the raw embedding


# ---------------- fused forward kernel ----------------
def _fsca_fused_kernel(x_ref, wc_ref, pe_ref, task_ref, w3_ref, b_ref, o_ref):
    """Whole FSCA forecast forward (identity backbone) in one VMEM-resident pass.

    x_ref   : (B*M, L)                 channel-major input series
    wc_ref  : (L, PATCH_NUM*D_MODEL)   folded pad + unfold + circular-conv weight
    pe_ref  : (1, PATCH_NUM*D_MODEL)   flattened positional embedding
    task_ref: (LEN_T, D_FF)            task-prompt embedding (first d_ff columns)
    w3_ref  : (PATCH_NUM, D_FF, PRED)  FlattenHead weight regrouped per token
    b_ref   : (1, PRED)                FlattenHead bias
    o_ref   : (B*M, PRED)              de-normalized forecast (channel-major)
    """
    # --- instance norm over time (L on lanes, B*M on sublanes) ---
    x = x_ref[...]
    mean = jnp.mean(x, axis=-1, keepdims=True)                # (BM, 1)
    xc = x - mean
    var = jnp.mean(xc * xc, axis=-1, keepdims=True)           # biased (torch unbiased=False)
    std = jnp.sqrt(var + 1e-5)
    xn = xc / std

    # --- enc_embedding: ReplicationPad1d((0,stride)) + unfold + circular
    #     Conv1d(k=3) folded into ONE matmul; positional embedding add fused ---
    enc = jnp.dot(xn, wc_ref[...], preferred_element_type=jnp.float32) + pe_ref[...]

    # --- FlattenHead over the last PATCH_NUM tokens of the (identity) backbone
    #     sequence: [last N_ENC_TAIL patch embeddings, LEN_T task-prompt tokens] ---
    acc = jnp.zeros((BM, PRED), jnp.float32)
    for tt in range(PATCH_NUM):                               # static unroll (5)
        if tt < N_ENC_TAIL:
            n = PATCH_NUM - N_ENC_TAIL + tt
            tok = enc[:, n * D_MODEL:n * D_MODEL + D_FF]      # (BM, D_FF)
        else:
            t = tt - N_ENC_TAIL
            tok = jnp.broadcast_to(task_ref[t:t + 1, :], (BM, D_FF))
        acc = acc + jnp.dot(tok, w3_ref[tt], preferred_element_type=jnp.float32)
    acc = acc + b_ref[...]

    # --- de-normalization in place; means/stdev never leave VMEM ---
    o_ref[...] = (acc * std + mean).astype(o_ref.dtype)


def fsca_fused(x_cm, wc, pe_flat, task32, w3, head_b):
    return pl.pallas_call(
        _fsca_fused_kernel,
        grid=(1,),
        in_specs=[
            pl.BlockSpec((BM, L), lambda i: (0, 0)),
            pl.BlockSpec((L, PATCH_NUM * D_MODEL), lambda i: (0, 0)),
            pl.BlockSpec((1, PATCH_NUM * D_MODEL), lambda i: (0, 0)),
            pl.BlockSpec((LEN_T, D_FF), lambda i: (0, 0)),
            pl.BlockSpec((PATCH_NUM, D_FF, PRED), lambda i: (0, 0, 0)),
            pl.BlockSpec((1, PRED), lambda i: (0, 0)),
        ],
        out_specs=pl.BlockSpec((BM, PRED), lambda i: (0, 0)),
        out_shape=jax.ShapeDtypeStruct((BM, PRED), jnp.float32),
    )(x_cm, wc, pe_flat, task32, w3, head_b)


# ---------------- parameter setup / exact weight folding ----------------
def sinusoidal_pe(n, d):
    pos = np.arange(n)[:, None].astype(np.float32)
    div = np.exp(np.arange(0, d, 2).astype(np.float32) * -(np.log(10000.0) / d))
    pe = np.zeros((n, d), np.float32)
    pe[:, 0::2] = np.sin(pos * div)
    pe[:, 1::2] = np.cos(pos * div)
    return jnp.asarray(pe)


def _embed_selection():
    """Static 0/1 tensor mapping the normalized series (length L) onto the
    (patch n, tap k, in-channel c) positions consumed by the circular Conv1d,
    including ReplicationPad1d((0, STRIDE)) and the circular patch-axis pad."""
    sel = np.zeros((L, 3, PATCH, PATCH_NUM), np.float32)
    for n in range(PATCH_NUM):
        for k in range(3):
            j = (n - 1 + k) % PATCH_NUM              # circular pad over patch axis
            for c in range(PATCH):
                t = min(j * STRIDE + c, L - 1)       # replication pad at the end
                sel[t, k, c, n] += 1.0
    return sel


_EMBED_SEL = _embed_selection()


def init_params(key):
    k = jax.random.split(key, 5)
    return {
        # TODO(synk): exact DataEmbedding_wo_time not reproducible without the repo;
        # canonical TokenEmbedding (circular Conv1d k=3, stored as (3, PATCH, D_MODEL),
        # i.e. torch W[:, :, k].T) + sinusoidal positional embedding is used.
        "w_embed": jax.random.normal(k[0], (3, PATCH, D_MODEL), jnp.float32) * 0.1,
        "pe": sinusoidal_pe(PATCH_NUM, D_MODEL),
        "fix_prompt": jax.random.normal(k[1], (LEN_P, LLM_D), jnp.float32) * 0.02,
        "task_prompt": jax.random.normal(k[2], (LEN_T, LLM_D), jnp.float32) * 0.02,
        "head_w": jax.random.normal(k[3], (HEAD_NF, PRED), jnp.float32) * (1.0 / np.sqrt(HEAD_NF)),
        "head_b": jax.random.normal(k[4], (PRED,), jnp.float32) * 0.01,
    }


def prepare_kernel_operands(params):
    """Fold model params into the operands the fused kernel consumes.
    Exact algebraic refactoring (no approximation), done once off the hot path."""
    w = np.asarray(params["w_embed"], np.float32)                         # (3, PATCH, D_MODEL)
    wc = np.einsum("tkcn,kcd->tnd", _EMBED_SEL, w).reshape(L, PATCH_NUM * D_MODEL)
    pe_flat = np.asarray(params["pe"], np.float32).reshape(1, PATCH_NUM * D_MODEL)
    task32 = np.asarray(params["task_prompt"], np.float32)[:, :D_FF]      # (LEN_T, D_FF)
    # FlattenHead flatten order is (d_ff, patch_num) row-major -> regroup rows per token.
    w3 = np.asarray(params["head_w"], np.float32).reshape(D_FF, PATCH_NUM, PRED).transpose(1, 0, 2)
    head_b = np.asarray(params["head_b"], np.float32).reshape(1, PRED)
    return tuple(jnp.asarray(a) for a in (wc, pe_flat, task32, w3, head_b))


# ---------------- forward ----------------
def forecast(params, x_enc):
    operands = prepare_kernel_operands(params)
    x_cm = jnp.transpose(x_enc, (0, 2, 1)).reshape(BM, L)     # (b m) l, channel-major
    out = fsca_fused(x_cm, *operands)                          # (B*M, PRED)
    dec = jnp.transpose(out.reshape(B, M, PRED), (0, 2, 1))    # (B, PRED, M)
    return dec


def forward(params, x_enc, x_mark_enc=None, x_dec=None, x_mark_dec=None):
    dec_out = forecast(params, x_enc)
    return dec_out[:, -PRED:, :]


# ---------------- pure-NumPy reference (original, unfused structure) ----------------
def _reference_forward(params, x_enc):
    """float64 re-implementation of the original forecast() (identity backbone)."""
    p = {k: np.asarray(v, np.float64) for k, v in params.items()}
    x = np.asarray(x_enc, np.float64)                          # (B, L, M)
    means = x.mean(axis=1, keepdims=True)
    xc = x - means
    stdev = np.sqrt((xc * xc).mean(axis=1, keepdims=True) + 1e-5)
    xn = xc / stdev
    xcm = np.transpose(xn, (0, 2, 1))                          # (B, M, L)
    xcm = np.concatenate([xcm, np.repeat(xcm[..., -1:], STRIDE, axis=-1)], axis=-1)
    idx = np.arange(PATCH_NUM)[:, None] * STRIDE + np.arange(PATCH)[None, :]
    patches = xcm[:, :, idx].reshape(BM, PATCH_NUM, PATCH)
    xp = np.concatenate([patches[:, -1:], patches, patches[:, :1]], axis=1)
    enc = sum(np.einsum("bnp,pd->bnd", xp[:, k:k + PATCH_NUM], p["w_embed"][k]) for k in range(3))
    enc = enc + p["pe"][None]
    enc = np.pad(enc, ((0, 0), (0, 0), (0, LLM_D - D_MODEL)))
    fix = np.broadcast_to(p["fix_prompt"][None], (BM, LEN_P, LLM_D))
    task = np.broadcast_to(p["task_prompt"][None], (BM, LEN_T, LLM_D))
    pieces = []
    for i in range(SPLIT_LEN):
        begin = i * P_INTERVAL
        end = PATCH_NUM if i == SPLIT_LEN - 1 else (i + 1) * P_INTERVAL
        if i == SPLIT_LEN - 1:
            pieces.append(enc[:, begin:end])
        else:
            pieces.append(np.concatenate([enc[:, begin:end], fix], axis=1))
    pieces.append(task)
    outputs = np.concatenate(pieces, axis=1)                   # (BM, TOTAL_LEN, 768)
    assert outputs.shape[1] == TOTAL_LEN
    last_hidden = outputs                                      # identity backbone surrogate
    dec = last_hidden[:, :, :D_FF].reshape(B, M, TOTAL_LEN, D_FF)
    dec = np.transpose(dec, (0, 1, 3, 2))[..., -PATCH_NUM:]    # (B, M, D_FF, PATCH_NUM)
    dec = dec.reshape(BM, HEAD_NF)
    dec = dec @ p["head_w"] + p["head_b"]
    dec = np.transpose(dec.reshape(B, M, PRED), (0, 2, 1))     # (B, PRED, M)
    dec = dec * stdev + means
    return dec[:, -PRED:, :]


if __name__ == "__main__":
    key = jax.random.PRNGKey(0)
    kx, kp = jax.random.split(key)
    x_enc = jax.random.normal(kx, (B, L, M), jnp.float32)
    x_mark_enc = jnp.zeros((B, L, 4), jnp.float32)   # unused by this model
    x_dec = jnp.zeros((B, PRED, M), jnp.float32)     # unused by this model
    x_mark_dec = jnp.zeros((B, PRED, 4), jnp.float32)

    params = init_params(kp)
    out = forward(params, x_enc, x_mark_enc, x_dec, x_mark_dec)
    out = jax.block_until_ready(out)
    assert out.shape == (B, PRED, M), out.shape
    assert bool(jnp.all(jnp.isfinite(out)))

    ref = _reference_forward(params, x_enc)
    np.testing.assert_allclose(np.asarray(out), ref, rtol=5e-3, atol=5e-3)
    print("KERNEL_OK")
</pallas_src>

<mosaic_0001>
module attributes {stable_mosaic.version = 11 : i64} {
  func.func @_fsca_fused_kernel(%arg0: i32, %arg1: memref<8x16xf32, #tpu.memory_space<vmem>>, %arg2: memref<16x160xf32, #tpu.memory_space<vmem>>, %arg3: memref<1x160xf32, #tpu.memory_space<vmem>>, %arg4: memref<4x32xf32, #tpu.memory_space<vmem>>, %arg5: memref<5x32x8xf32, #tpu.memory_space<vmem>>, %arg6: memref<1x8xf32, #tpu.memory_space<vmem>>, %arg7: memref<8x8xf32, #tpu.memory_space<vmem>>) attributes {dimension_semantics = [#tpu.dimension_semantics<arbitrary>], iteration_bounds = array<i64: 1>, scalar_prefetch = 0 : i64, scratch_operands = 0 : i64, tpu.core_type = #tpu.core_type<tc>, window_params = [{pipeline_mode = #tpu.pipeline_mode<synchronous>, transform_indices = @transform_0, window_bounds = array<i64: 8, 16>}, {pipeline_mode = #tpu.pipeline_mode<synchronous>, transform_indices = @transform_1, window_bounds = array<i64: 16, 160>}, {pipeline_mode = #tpu.pipeline_mode<synchronous>, transform_indices = @transform_2, window_bounds = array<i64: 1, 160>}, {pipeline_mode = #tpu.pipeline_mode<synchronous>, transform_indices = @transform_3, window_bounds = array<i64: 4, 32>}, {pipeline_mode = #tpu.pipeline_mode<synchronous>, transform_indices = @transform_4, window_bounds = array<i64: 5, 32, 8>}, {pipeline_mode = #tpu.pipeline_mode<synchronous>, transform_indices = @transform_5, window_bounds = array<i64: 1, 8>}, {pipeline_mode = #tpu.pipeline_mode<synchronous>, transform_indices = @transform_6, window_bounds = array<i64: 8, 8>}]} {
    %c0 = arith.constant 0 : index
    %c0_0 = arith.constant 0 : index
    %0 = vector.load %arg1[%c0, %c0_0] : memref<8x16xf32, #tpu.memory_space<vmem>>, vector<8x16xf32>
    %cst = arith.constant dense<0.000000e+00> : vector<8xf32>
    %1 = vector.multi_reduction <add>, %0, %cst [1] : vector<8x16xf32> to vector<8xf32>
    %2 = vector.shape_cast %1 : vector<8xf32> to vector<8x1xf32>
    %cst_1 = arith.constant 1.600000e+01 : f32
    %3 = vector.broadcast %cst_1 : f32 to vector<8x1xf32>
    %4 = arith.divf %2, %3 : vector<8x1xf32>
    %5 = vector.broadcast %4 : vector<8x1xf32> to vector<8x16xf32>
    %6 = arith.subf %0, %5 : vector<8x16xf32>
    %7 = arith.mulf %6, %6 : vector<8x16xf32>
    %cst_2 = arith.constant dense<0.000000e+00> : vector<8xf32>
    %8 = vector.multi_reduction <add>, %7, %cst_2 [1] : vector<8x16xf32> to vector<8xf32>
    %9 = vector.shape_cast %8 : vector<8xf32> to vector<8x1xf32>
    %cst_3 = arith.constant 1.600000e+01 : f32
    %10 = vector.broadcast %cst_3 : f32 to vector<8x1xf32>
    %11 = arith.divf %9, %10 : vector<8x1xf32>
    %cst_4 = arith.constant 9.99999974E-6 : f32
    %12 = vector.broadcast %cst_4 : f32 to vector<8x1xf32>
    %13 = arith.addf %11, %12 : vector<8x1xf32>
    %14 = math.sqrt %13 : vector<8x1xf32>
    %15 = vector.broadcast %14 : vector<8x1xf32> to vector<8x16xf32>
    %16 = arith.divf %6, %15 : vector<8x16xf32>
    %c0_5 = arith.constant 0 : index
    %c0_6 = arith.constant 0 : index
    %17 = vector.load %arg2[%c0_5, %c0_6] : memref<16x160xf32, #tpu.memory_space<vmem>>, vector<16x160xf32>
    %cst_7 = arith.constant dense<0.000000e+00> : vector<8x160xf32>
    %18 = tpu.matmul %16, %17, %cst_7 {dimension_numbers = #tpu.dot_dimension_numbers<[1], [0], [0], [1], [0, 0, 1, 1], [], []>} : vector<8x16xf32>, vector<16x160xf32>, vector<8x160xf32> -> vector<8x160xf32>
    %c0_8 = arith.constant 0 : index
    %c0_9 = arith.constant 0 : index
    %19 = vector.load %arg3[%c0_8, %c0_9] : memref<1x160xf32, #tpu.memory_space<vmem>>, vector<1x160xf32>
    %20 = vector.broadcast %19 : vector<1x160xf32> to vector<8x160xf32>
    %21 = arith.addf %18, %20 : vector<8x160xf32>
    %cst_10 = arith.constant 0.000000e+00 : f32
    %22 = vector.broadcast %cst_10 : f32 to vector<8x8xf32>
    %23 = vector.extract_strided_slice %21 {offsets = [0, 128], sizes = [8, 32], strides = [1, 1]} : vector<8x160xf32> to vector<8x32xf32>
    %c0_11 = arith.constant 0 : index
    %c0_12 = arith.constant 0 : index
    %c0_13 = arith.constant 0 : index
    %24 = vector.load %arg5[%c0_11, %c0_12, %c0_13] : memref<5x32x8xf32, #tpu.memory_space<vmem>>, vector<1x32x8xf32>
    %25 = vector.shape_cast %24 : vector<1x32x8xf32> to vector<32x8xf32>
    %cst_14 = arith.constant dense<0.000000e+00> : vector<8x8xf32>
    %26 = tpu.matmul %23, %25, %cst_14 {dimension_numbers = #tpu.dot_dimension_numbers<[1], [0], [0], [1], [0, 0, 1, 1], [], []>} : vector<8x32xf32>, vector<32x8xf32>, vector<8x8xf32> -> vector<8x8xf32>
    %27 = arith.addf %22, %26 : vector<8x8xf32>
    %c0_15 = arith.constant 0 : index
    %c0_16 = arith.constant 0 : index
    %28 = vector.load %arg4[%c0_15, %c0_16] : memref<4x32xf32, #tpu.memory_space<vmem>>, vector<1x32xf32>
    %29 = vector.shape_cast %28 : vector<1x32xf32> to vector<1x32xf32>
    %30 = vector.broadcast %29 : vector<1x32xf32> to vector<8x32xf32>
    %c1 = arith.constant 1 : index
    %c0_17 = arith.constant 0 : index
    %c0_18 = arith.constant 0 : index
    %31 = vector.load %arg5[%c1, %c0_17, %c0_18] : memref<5x32x8xf32, #tpu.memory_space<vmem>>, vector<1x32x8xf32>
    %32 = vector.shape_cast %31 : vector<1x32x8xf32> to vector<32x8xf32>
    %cst_19 = arith.constant dense<0.000000e+00> : vector<8x8xf32>
    %33 = tpu.matmul %30, %32, %cst_19 {dimension_numbers = #tpu.dot_dimension_numbers<[1], [0], [0], [1], [0, 0, 1, 1], [], []>} : vector<8x32xf32>, vector<32x8xf32>, vector<8x8xf32> -> vector<8x8xf32>
    %34 = arith.addf %27, %33 : vector<8x8xf32>
    %c1_20 = arith.constant 1 : index
    %c0_21 = arith.constant 0 : index
    %35 = vector.load %arg4[%c1_20, %c0_21] : memref<4x32xf32, #tpu.memory_space<vmem>>, vector<1x32xf32>
    %36 = vector.shape_cast %35 : vector<1x32xf32> to vector<1x32xf32>
    %37 = vector.broadcast %36 : vector<1x32xf32> to vector<8x32xf32>
    %c2 = arith.constant 2 : index
    %c0_22 = arith.constant 0 : index
    %c0_23 = arith.constant 0 : index
    %38 = vector.load %arg5[%c2, %c0_22, %c0_23] : memref<5x32x8xf32, #tpu.memory_space<vmem>>, vector<1x32x8xf32>
    %39 = vector.shape_cast %38 : vector<1x32x8xf32> to vector<32x8xf32>
    %cst_24 = arith.constant dense<0.000000e+00> : vector<8x8xf32>
    %40 = tpu.matmul %37, %39, %cst_24 {dimension_numbers = #tpu.dot_dimension_numbers<[1], [0], [0], [1], [0, 0, 1, 1], [], []>} : vector<8x32xf32>, vector<32x8xf32>, vector<8x8xf32> -> vector<8x8xf32>
    %41 = arith.addf %34, %40 : vector<8x8xf32>
    %c2_25 = arith.constant 2 : index
    %c0_26 = arith.constant 0 : index
    %42 = vector.load %arg4[%c2_25, %c0_26] : memref<4x32xf32, #tpu.memory_space<vmem>>, vector<1x32xf32>
    %43 = vector.shape_cast %42 : vector<1x32xf32> to vector<1x32xf32>
    %44 = vector.broadcast %43 : vector<1x32xf32> to vector<8x32xf32>
    %c3 = arith.constant 3 : index
    %c0_27 = arith.constant 0 : index
    %c0_28 = arith.constant 0 : index
    %45 = vector.load %arg5[%c3, %c0_27, %c0_28] : memref<5x32x8xf32, #tpu.memory_space<vmem>>, vector<1x32x8xf32>
    %46 = vector.shape_cast %45 : vector<1x32x8xf32> to vector<32x8xf32>
    %cst_29 = arith.constant dense<0.000000e+00> : vector<8x8xf32>
    %47 = tpu.matmul %44, %46, %cst_29 {dimension_numbers = #tpu.dot_dimension_numbers<[1], [0], [0], [1], [0, 0, 1, 1], [], []>} : vector<8x32xf32>, vector<32x8xf32>, vector<8x8xf32> -> vector<8x8xf32>
    %48 = arith.addf %41, %47 : vector<8x8xf32>
    %c3_30 = arith.constant 3 : index
    %c0_31 = arith.constant 0 : index
    %49 = vector.load %arg4[%c3_30, %c0_31] : memref<4x32xf32, #tpu.memory_space<vmem>>, vector<1x32xf32>
    %50 = vector.shape_cast %49 : vector<1x32xf32> to vector<1x32xf32>
    %51 = vector.broadcast %50 : vector<1x32xf32> to vector<8x32xf32>
    %c4 = arith.constant 4 : index
    %c0_32 = arith.constant 0 : index
    %c0_33 = arith.constant 0 : index
    %52 = vector.load %arg5[%c4, %c0_32, %c0_33] : memref<5x32x8xf32, #tpu.memory_space<vmem>>, vector<1x32x8xf32>
    %53 = vector.shape_cast %52 : vector<1x32x8xf32> to vector<32x8xf32>
    %cst_34 = arith.constant dense<0.000000e+00> : vector<8x8xf32>
    %54 = tpu.matmul %51, %53, %cst_34 {dimension_numbers = #tpu.dot_dimension_numbers<[1], [0], [0], [1], [0, 0, 1, 1], [], []>} : vector<8x32xf32>, vector<32x8xf32>, vector<8x8xf32> -> vector<8x8xf32>
    %55 = arith.addf %48, %54 : vector<8x8xf32>
    %c0_35 = arith.constant 0 : index
    %c0_36 = arith.constant 0 : index
    %56 = vector.load %arg6[%c0_35, %c0_36] : memref<1x8xf32, #tpu.memory_space<vmem>>, vector<1x8xf32>
    %57 = vector.broadcast %56 : vector<1x8xf32> to vector<8x8xf32>
    %58 = arith.addf %55, %57 : vector<8x8xf32>
    %59 = vector.broadcast %14 : vector<8x1xf32> to vector<8x8xf32>
    %60 = arith.mulf %58, %59 : vector<8x8xf32>
    %61 = vector.broadcast %4 : vector<8x1xf32> to vector<8x8xf32>
    %62 = arith.addf %60, %61 : vector<8x8xf32>
    %c0_37 = arith.constant 0 : index
    %c0_38 = arith.constant 0 : index
    %63 = vector.load %arg7[%c0_37, %c0_38] : memref<8x8xf32, #tpu.memory_space<vmem>>, vector<8x8xf32>
    tpu.vector_store %arg7[%c0_37, %c0_38], %62 {strides = array<i32>} : memref<8x8xf32, #tpu.memory_space<vmem>>, vector<8x8xf32>,
    return
  }
  func.func @transform_0(%arg0: i32) -> (i32, i32) {
    %c0_i32 = arith.constant 0 : i32
    %c0_i32_0 = arith.constant 0 : i32
    %c0_i32_1 = arith.constant 0 : i32
    return %c0_i32, %c0_i32_0 : i32, i32
  }
  func.func @transform_1(%arg0: i32) -> (i32, i32) {
    %c0_i32 = arith.constant 0 : i32
    %c0_i32_0 = arith.constant 0 : i32
    %c0_i32_1 = arith.constant 0 : i32
    return %c0_i32, %c0_i32_0 : i32, i32
  }
  func.func @transform_2(%arg0: i32) -> (i32, i32) {
    %c0_i32 = arith.constant 0 : i32
    %c0_i32_0 = arith.constant 0 : i32
    %c0_i32_1 = arith.constant 0 : i32
    return %c0_i32, %c0_i32_0 : i32, i32
  }
  func.func @transform_3(%arg0: i32) -> (i32, i32) {
    %c0_i32 = arith.constant 0 : i32
    %c0_i32_0 = arith.constant 0 : i32
    %c0_i32_1 = arith.constant 0 : i32
    return %c0_i32, %c0_i32_0 : i32, i32
  }
  func.func @transform_4(%arg0: i32) -> (i32, i32, i32) {
    %c0_i32 = arith.constant 0 : i32
    %c0_i32_0 = arith.constant 0 : i32
    %c0_i32_1 = arith.constant 0 : i32
    %c0_i32_2 = arith.constant 0 : i32
    return %c0_i32, %c0_i32_0, %c0_i32_1 : i32, i32, i32
  }
  func.func @transform_5(%arg0: i32) -> (i32, i32) {
    %c0_i32 = arith.constant 0 : i32
    %c0_i32_0 = arith.constant 0 : i32
    %c0_i32_1 = arith.constant 0 : i32
    return %c0_i32, %c0_i32_0 : i32, i32
  }
  func.func @transform_6(%arg0: i32) -> (i32, i32) {
    %c0_i32 = arith.constant 0 : i32
    %c0_i32_0 = arith.constant 0 : i32
    %c0_i32_1 = arith.constant 0 : i32
    return %c0_i32, %c0_i32_0 : i32, i32
  }
}

</mosaic_0001>

<bundles_post_ra>
// kernel: tpu_custom_call.1
= control target key start
LH: loop header
LB: loop body
LE: loop exit
PB: predicated region body
PF: predicated region fallthrough
CT: control target
= control target key end

     0   :  { %vm25_vm0 = vcmask 130048   ;;  %s924_s0 = inlined_call_operand.vmem [shape: f32[8,16], index: 0, kind: input, shape index: {}]   ;;  %s925_s1 = inlined_call_operand.vmem [shape: f32[16,160], index: 1, kind: input, shape index: {}]   ;;  %s926_s2 = inlined_call_operand.vmem [shape: f32[1,160], index: 2, kind: input, shape index: {}]   ;;  %s927_s3 = inlined_call_operand.vmem [shape: f32[4,32], index: 3, kind: input, shape index: {}]   ;;  %s928_s4 = inlined_call_operand.vmem [shape: f32[5,32,8], index: 4, kind: input, shape index: {}]   ;;  %s929_s5 = inlined_call_operand.vmem [shape: f32[1,8], index: 5, kind: input, shape index: {}]   ;;  %s930_s6 = inlined_call_operand.hbm [shape: f32[8,8], index: 6, kind: output, shape index: {}]  }
   0x1   :  { %v24_v0 = vld [vmem:[%s924_s0] sm:$0xff] }
   0x2   :  { %11 = vsyncpa [#allocation3], 0  ;;  %v26_v1 = vsel %vm25_vm0, %v24_v0, 0.0  ;;  %v48_v7 = vld [vmem:[%s925_s1 + $0x8] sm:$0xff]  ;;  %v50_v8 = vld [vmem:[%s925_s1 + $0x18] sm:$0xff]  ;;  %v743_v12 = vmov 0.0   ;;  %v53_v54 = vlaneseq }
   0x3   :  { %27 = vadd.xlane.f32.xlu0 %v26_v1  ;;  %v47_v9 = vld [vmem:[%s925_s1] sm:$0xff]  ;;  %v677_v10 = vpack.c.bf16 %v50_v8, %v48_v7  ;;  %v49_v11 = vld [vmem:[%s925_s1 + $0x10] sm:$0xff]  ;;  %125 = vmatprep.mubr.f32.mxu0 %v743_v12  ;;  %v573_v15 = vld [vmem:[%s928_s4 + $0x28] sm:$0xff]  ;;  %v744_v17 = vmov 0.0|0.0   ;;  %vm745_vm1 = vmmov 0   ;;  %vm145_vm2 = vcmask 261120  }
   0x4   :  { %v679_v13 = vpack.c.bf16 %v49_v11, %v47_v9  ;;  %v572_v14 = vld [vmem:[%s928_s4 + $0x20] sm:$0xff]  ;;  %v574_v16 = vld [vmem:[%s928_s4 + $0x30] sm:$0xff]  ;;  %681 = vmatprep.subr.bf16.mxu1 %v744_v17  ;;  %v575_v19 = vld [vmem:[%s928_s4 + $0x38] sm:$0xff]  ;;  %630 = vmatprep.mubr.msk.f32.mxu1 %vm745_vm1, %v743_v12  ;;  %v54_v55 = vshrl.u32 %v53_v54, 7  ;;  %vm554_vm5 = vcmask 64512  }
   0x5   :  { %678 = vmatprep.subr.bf16.mxu0 %v677_v10  ;;  %v682_v18 = vpack.c.bf16 %v573_v15, %v572_v14  ;;  %v685_v20 = vpack.c.bf16 %v575_v19, %v574_v16  ;;  %v579_v21 = vld [vmem:[%s928_s4 + $0x40] sm:$0xff]  ;;  %v580_v22 = vld [vmem:[%s928_s4 + $0x48] sm:$0xff]  ;;  %v133_v38 = vld [vmem:[%s928_s4 + $0x10] sm:$0xff] }
   0x6   :  { %680 = vmatpush1.bf16.msra.mxu0 %v679_v13  ;;  %v571_v23 = vld [vmem:[%s927_s3] ss:$0 sm:$0xff]  ;;  %v694_v24 = vpack.c.bf16 %v580_v22, %v579_v21  ;;  %v132_v34 = vld [vmem:[%s928_s4 + $0x8] sm:$0xff]  ;;  %v134_v39 = vld [vmem:[%s928_s4 + $0x18] sm:$0xff]  ;;  %v55_v56 = vsub.s32 1, %v54_v55 }
   0x7   :  { %687 = vmatprep.subr.bf16.mxu0 %v744_v17  ;;  %683 = vmatpush3.bf16.msra.mxu1 %v682_v18  ;;  %v131_v33 = vld [vmem:[%s928_s4] sm:$0xff]  ;;  %v691_v40 = vpack.c.bf16 %v134_v39, %v133_v38  ;;  %v581_v41 = vld [vmem:[%s928_s4 + $0x50] sm:$0xff]  ;;  %v582_v42 = vld [vmem:[%s928_s4 + $0x58] sm:$0xff] }
   0x8   :  { %684 = vmatprep.subr.bf16.mxu1 %v744_v17  ;;  %v688_v36 = vpack.c.bf16 %v132_v34, %v131_v33  ;;  %v697_v43 = vpack.c.bf16 %v582_v42, %v581_v41  ;;  %v591_v44 = vld [vmem:[%s928_s4 + $0x80] sm:$0xff]  ;;  %v592_v45 = vld [vmem:[%s928_s4 + $0x88] sm:$0xff]  ;;  %v593_v48 = vld [vmem:[%s928_s4 + $0x90] sm:$0xff] }
   0x9   :  { %v706_v46 = vpack.c.bf16 %v592_v45, %v591_v44  ;;  %v578_v47 = vld [vmem:[%s927_s3 + $0x1] ss:$0 sm:$0xff]  ;;  %v594_v49 = vld [vmem:[%s928_s4 + $0x98] sm:$0xff]  ;;  %v590_v51 = vld [vmem:[%s927_s3 + $0x3] ss:$0 sm:$0xff] }
   0xa   :  { %v709_v50 = vpack.c.bf16 %v594_v49, %v593_v48  ;;  %v51_v57 = vld [vmem:[%s926_s2] sm:$0x3]  ;;  %v586_v60 = vld [vmem:[%s928_s4 + $0x68] sm:$0xff]  ;;  %v587_v1 = vld [vmem:[%s928_s4 + $0x70] sm:$0xff] }
   0xb   :  { %686 = vmatpush3.bf16.msra.mxu1 %v685_v20  ;;  %v56_v58 = vrot.slane %v51_v57, %v55_v56  ;;  %v585_v59 = vld [vmem:[%s928_s4 + $0x60] sm:$0xff] }
   0xc   :  { %693 = vmatprep.subr.bf16.mxu1 %v744_v17  ;;  %v700_v63 = vpack.c.bf16 %v586_v60, %v585_v59 }
   0xe   :  { %631 = vmatmul.mubr.msk.f32.vlgmr.msra.gmra.mrb[0].mxu1 %vm145_vm2, %v571_v23 }
   0xf   :  { %695 = vmatpush3.bf16.msra.mxu1 %v694_v24  ;;  %652 = vmatprep.mubr.msk.f32.mxu1 %vm745_vm1, %v743_v12 }
  0x10   :  { %696 = vmatprep.subr.bf16.mxu1 %v744_v17 }
  0x13   :  { %698 = vmatpush3.bf16.msra.mxu1 %v697_v43 }
  0x14   :  { %705 = vmatprep.subr.bf16.mxu1 %v744_v17 }
  0x16   :  { %653 = vmatmul.mubr.msk.f32.vlgmr.msra.gmra.mrb[2].mxu1 %vm145_vm2, %v578_v47 }
  0x17   :  { %707 = vmatpush3.bf16.msra.mxu1 %v706_v46  ;;  %674 = vmatprep.mubr.msk.f32.mxu1 %vm745_vm1, %v743_v12 }
  0x18   :  { %708 = vmatprep.subr.bf16.mxu1 %v744_v17 }
  0x1b   :  { %710 = vmatpush3.bf16.msra.mxu1 %v709_v50 }
  0x1e   :  { %675 = vmatmul.mubr.msk.f32.vlgmr.msra.gmra.mrb[4].mxu1 %vm145_vm2, %v590_v51 }
  0x90   :  { %v28_v2 = vpop.xlane.xlu0 %27 }
  0x91   :  { %v786_v3 = vmul.f32 0.0625, %v28_v2  ;;  %v588_v2 = vld [vmem:[%s928_s4 + $0x78] sm:$0xff] }
  0x93   :  { %v31_v4 = vsub.f32 %v24_v0, %v786_v3 }
  0x95   :  { %v32_v5 = vmul.f32 %v31_v4, %v31_v4 }
  0x97   :  { %v33_v6 = vsel %vm25_vm0, %v32_v5, 0.0  ;;  %v584_v5 = vld [vmem:[%s927_s3 + $0x2] ss:$0 sm:$0xff]  ;;  %s746_s3 = smov [#allocation2]  }
  0x98   :  { %34 = vadd.xlane.f32.xlu0 %v33_v6  ;;  %s562_s28 = sshll.u32 %s746_s3, 4  ;;  %s563_s28 = int_to_ptr.vmem [resolvable:$true] %s562_s28 }
  0x99   :  { %s719_s29 = scalar_lea.vmem %s563_s28, 128  ;;  %p724_p1 = scmp.lt.s32.totalorder %s563_s28, %s563_s28 }
  0x9a   :  { %p720_p0 = scmp.ne.s32.totalorder %s563_s28, %s719_s29  ;;  %p725_p2 = scmp.lt.s32.totalorder %s719_s29, %s719_s29 }
  0x9c   :  { %p726_p3 = por %p725_p2, %p724_p1 }
  0x9e   :  { %p727_p4 = pnand %p726_p3, %p720_p0 }
  0xe1   :  { %v215_v52 = vpop.f32.mrb[0].mxu1 }
  0xe2   :  { %v632_v53 = vpop.f32.mrb[1].mxu1 }
  0xe9   :  { %v371_v6 = vpop.f32.mrb[2].mxu1 }
  0xea   :  { %v654_v7 = vpop.f32.mrb[3].mxu1 }
  0xf1   :  { %v539_v8 = vpop.f32.mrb[4].mxu1 }
  0xf2   :  { %v676_v9 = vpop.f32.mrb[5].mxu1 }
 0x125   :  { %v35_v25 = vpop.xlane.xlu0 %34 }
 0x126   :  { %v36_v26 = vmul.f32 0.0625, %v35_v25 }
 0x128   :  { %v37_v27 = vadd.f32 1e-05, %v36_v26 }
 0x12a   :  { %715 = vrsqrt.f32 %v37_v27  ;;  %vm40_vm3 = vcmp.eq.f32.partialorder %v37_v27, inf  ;;  %v43_v30 = vand.u32 2147483648, %v37_v27  ;;  %vm42_vm4 = vcmp.eq.f32.partialorder %v37_v27, 0.0 }
 0x134   :  { %v716_v28 = vpop.eup %715 }
 0x135   :  { %v39_v29 = vmul.f32 %v716_v28, %v37_v27 }
 0x137   :  { %v41_v31 = vsel %vm40_vm3, %v37_v27, %v39_v29 }
 0x138   :  { %v834_v32 = vsel %vm42_vm4, %v43_v30, %v41_v31 }
 0x139   :  { %717 = vrcp.f32 %v834_v32 }
 0x143   :  { %v718_v35 = vpop.eup %717 }
 0x144   :  { %v46_v37 = vmul.f32 %v718_v35, %v31_v4  ;;  %v703_v4 = vpack.c.bf16 %v588_v2, %v587_v1 }
 0x146   :  { %570 = vmatmul.mubr.msk.f32.vlgmr.msra.gmra.mrb[0].mxu0 %vm25_vm0, %v46_v37 }
 0x147   :  { %689 = vmatpush3.bf16.msra.mxu0 %v688_v36  ;;  %641 = vmatprep.mubr.msk.f32.mxu0 %vm745_vm1, %v743_v12 }
 0x148   :  { %690 = vmatprep.subr.bf16.mxu0 %v744_v17 }
 0x14b   :  { %692 = vmatpush3.bf16.msra.mxu0 %v691_v40 }
 0x14c   :  { %699 = vmatprep.subr.bf16.mxu0 %v744_v17 }
 0x219   :  { %v127_v61 = vpop.f32.mrb[0].mxu0 }
 0x21a   :  { %v128_v62 = vpop.f32.mrb[1].mxu0 }
 0x21b   :  { %v129_v0 = vadd.f32 %v128_v62, %v56_v58 }
 0x21d   :  { %642 = vmatmul.mubr.msk.f32.vlgmr.msra.gmra.mrb[2].mxu0 %vm145_vm2, %v129_v0 }
 0x21e   :  { %701 = vmatpush3.bf16.msra.mxu0 %v700_v63  ;;  %663 = vmatprep.mubr.msk.f32.mxu0 %vm745_vm1, %v743_v12 }
 0x21f   :  { %702 = vmatprep.subr.bf16.mxu0 %v744_v17  ;;  %v596_v17 = vld [vmem:[%s929_s5] ss:$0 sm:$0xff] }
 0x222   :  { %704 = vmatpush3.bf16.msra.mxu0 %v703_v4 }
 0x225   :  { %664 = vmatmul.mubr.msk.f32.vlgmr.msra.gmra.mrb[4].mxu0 %vm145_vm2, %v584_v5 }
 0x2f0   :  { %v288_v10 = vpop.f32.mrb[2].mxu0 }
 0x2f1   :  { %v289_v11 = vadd.f32 %v288_v10, %v215_v52  ;;  %v643_v13 = vpop.f32.mrb[3].mxu0 }
 0x2f3   :  { %v375_v14 = vadd.f32 %v371_v6, %v289_v11 }
 0x2f8   :  { %v455_v15 = vpop.f32.mrb[4].mxu0 }
 0x2f9   :  { %v459_v16 = vadd.f32 %v455_v15, %v375_v14  ;;  %v665_v12 = vpop.f32.mrb[5].mxu0 }
 0x2fb   :  { %v543_v18 = vadd.f32 %v539_v8, %v459_v16 }
 0x2fd   :  { %v551_v19 = vadd.f32 %v596_v17, %v543_v18 }
 0x2ff   :  { %v552_v20 = vmul.f32 %v551_v19, %v834_v32 }
 0x301   :  { %v553_v21 = vadd.f32 %v552_v20, %v786_v3 }
 0x303   :  { %555 = vst.msk [vmem:[#allocation2] sm:$0xff] %vm554_vm5, %v553_v21 }
 0x304   :  { %730 = shalt.err (!%p727_p4)
}
 0x305   :  { %s731_s7 = scalar_lea.hbm %s930_s6, 128 }
 0x306   :  { %p732_p5 = scmp.ne.s32.totalorder %s930_s6, %s731_s7  ;;  %p735_p6 = scmp.lt.u32.totalorder %s731_s7, %s930_s6 }
 0x308   :  { %p737_p7 = pnand %p735_p6, %p732_p5 }
 0x30a   :  { %740 = shalt.err (!%p737_p7)
}
 0x30b   :  { %565 = dma.vmem_to_hbm [thread:$0]  %s563_s28, 128, %s930_s6, [#allocation3]  }
 0x30c   :  { %741 = dma.done.wait [#allocation3], 128  }
 0x30d   :  { %742 = vsyncadd [#allocation3], 4294967168 }
 0x30e   :  { %569 = vsyncpa [#allocation3], 1 }

</bundles_post_ra>
